<compile_context>
chip_gen: v7x
topology: tpu7x:2x2x1
jax: 0.10.0
libtpu: 0.0.40
codegen_flags: <defaults>
</compile_context>

<pallas_src>
import functools

import jax
import jax.numpy as jnp
from jax.experimental import pallas as pl
from jax.experimental.pallas import tpu as pltpu

LANES = 128  # TPU vreg lane width


def _round_up(n, m):
    return ((n + m - 1) // m) * m


def _mlp_kernel(x_ref, w_ref, o_ref, *, feature, f_pad, output_size, compute_dtype):
    """x_ref: (tile_B, F) raw input; w_ref: packed (f_pad+16+128, 128) weight slab
    [rows 0:F = W1 | row f_pad = b1, row f_pad+1 = b2 | rows f_pad+16 : +128 = W2];
    o_ref: (tile_B, 128) lane-dense output, first `output_size` lanes valid."""
    x = x_ref[...].astype(compute_dtype)                         # (tB, F) bf16
    w1 = w_ref[:feature, :]                                      # (F, 128) bf16
    bias = w_ref[f_pad:f_pad + 16, :].astype(jnp.float32)        # (16, 128) f32
    b1 = bias[0:1, :]                                            # (1, 128)
    b2 = bias[1:2, :]                                            # (1, 128)
    w2 = w_ref[f_pad + 16:f_pad + 16 + LANES, :]                 # (128, 128) bf16

    # Layer 1 (MXU, f32 accumulate) + bias + ReLU.  Padded lanes stay exactly 0.
    h = jnp.dot(x, w1, preferred_element_type=jnp.float32) + b1  # (tB, 128) f32
    h = jnp.maximum(h, 0.0)

    # Layer 2 (MXU) + bias.  Padded rows of w2 are zero, so padded lanes of h are inert.
    logits = jnp.dot(h.astype(compute_dtype), w2,
                     preferred_element_type=jnp.float32) + b2    # (tB, 128) f32

    if output_size == 1:
        # Numerically stable sigmoid; reciprocal on the EUP (approx vrcp).
        z = jnp.exp(-jnp.abs(logits))
        inv = pl.reciprocal(1.0 + z, approx=True)
        o_ref[...] = jnp.where(logits >= 0.0, inv, z * inv).astype(o_ref.dtype)
    else:
        # nn.Softmax(dim=0): normalize over the batch axis (whole batch in this block).
        m = jnp.max(logits, axis=0, keepdims=True)               # XLU
        e = jnp.exp(logits - m)                                  # EUP
        denom = jnp.sum(e, axis=0, keepdims=True)                # XLU
        o_ref[...] = (e * pl.reciprocal(denom, approx=True)).astype(o_ref.dtype)


def pack_weights(w1, b1, w2, b2, compute_dtype=jnp.bfloat16):
    """Pack W1/b1/W2/b2 into one lane-dense bf16 slab (done once, not per call)."""
    F, H = w1.shape
    O = w2.shape[1]
    assert H <= LANES and O <= LANES, "packing assumes hidden <= 128 and output <= 128"
    f_pad = _round_up(F, 16)                      # keep slices bf16-sublane aligned
    rows = f_pad + 16 + LANES
    w = jnp.zeros((rows, LANES), compute_dtype)
    w = w.at[:F, :H].set(w1.astype(compute_dtype))
    w = w.at[f_pad, :H].set(b1.reshape(-1).astype(compute_dtype))
    w = w.at[f_pad + 1, :O].set(b2.reshape(-1).astype(compute_dtype))
    w = w.at[f_pad + 16:f_pad + 16 + H, :O].set(w2.astype(compute_dtype))
    return w, f_pad


def _pick_tile(batch, preferred=(8192, 4096, 2048, 1024, 512, 256, 128, 64, 32, 16, 8)):
    """Largest preferred batch tile (multiple of 8) dividing B; else single block."""
    for t in preferred:
        if t <= batch and batch % t == 0:
            return t
    return batch


def simple_mlp_forward(x, w1, b1, w2, b2,
                       compute_dtype=jnp.bfloat16, out_dtype=jnp.bfloat16):
    """SimpleMLP forward as one Pallas call (raw x in, resident packed weights,
    bf16 lane-dense output; batch-gridded + parallel for the sigmoid path)."""
    B, F = x.shape
    O = w2.shape[1]
    w_pack, f_pad = pack_weights(w1, b1, w2, b2, compute_dtype)
    w_rows = w_pack.shape[0]

    if O == 1:
        tile_b = _pick_tile(B)          # per-row op -> pipelined batch grid
        semantics = ("parallel",)       # shard across v7x's 2 TensorCores
    else:
        tile_b = B                      # softmax(dim=0) reduces over the batch axis
        semantics = ("arbitrary",)
    grid = (B // tile_b,)

    kernel = functools.partial(_mlp_kernel, feature=F, f_pad=f_pad,
                               output_size=O, compute_dtype=compute_dtype)

    out_pad = pl.pallas_call(
        kernel,
        out_shape=jax.ShapeDtypeStruct((B, LANES), out_dtype),
        grid=grid,
        in_specs=[pl.BlockSpec((tile_b, F), lambda i: (i, 0)),        # raw x tile
                  pl.BlockSpec((w_rows, LANES), lambda i: (0, 0))],   # resident weights
        out_specs=pl.BlockSpec((tile_b, LANES), lambda i: (i, 0)),
        compiler_params=pltpu.CompilerParams(dimension_semantics=semantics),
    )(x, w_pack)
    return out_pad[:, :O]               # slice back to the true output width


def init_params(key, feature_size, hidden_size, output_size):
    """Deterministic PyTorch-style init: U(-1/sqrt(fan_in), 1/sqrt(fan_in))."""
    k1, k2, k3, k4 = jax.random.split(key, 4)
    lim1 = 1.0 / jnp.sqrt(feature_size)
    lim2 = 1.0 / jnp.sqrt(hidden_size)
    w1 = jax.random.uniform(k1, (feature_size, hidden_size), jnp.float32, -lim1, lim1)
    b1 = jax.random.uniform(k2, (1, hidden_size), jnp.float32, -lim1, lim1)
    w2 = jax.random.uniform(k3, (hidden_size, output_size), jnp.float32, -lim2, lim2)
    b2 = jax.random.uniform(k4, (1, output_size), jnp.float32, -lim2, lim2)
    return w1, b1, w2, b2


def reference_forward(x, w1, b1, w2, b2):
    """Pure-f32 reference with the exact PyTorch semantics."""
    h = jnp.maximum(x @ w1 + b1, 0.0)
    logits = h @ w2 + b2
    if logits.shape[1] == 1:
        return jax.nn.sigmoid(logits)
    return jax.nn.softmax(logits, axis=0)


def reference_forward_packed(x, w1, b1, w2, b2,
                             compute_dtype=jnp.bfloat16, out_dtype=jnp.bfloat16):
    """Reference mirroring the kernel numerics (bf16 operands, f32 accum, bf16 out)."""
    O = w2.shape[1]
    xf = x.astype(compute_dtype).astype(jnp.float32)
    w1f = w1.astype(compute_dtype).astype(jnp.float32)
    b1f = b1.astype(compute_dtype).astype(jnp.float32)
    w2f = w2.astype(compute_dtype).astype(jnp.float32)
    b2f = b2.astype(compute_dtype).astype(jnp.float32)
    h = jnp.maximum(xf @ w1f + b1f, 0.0)
    h = h.astype(compute_dtype).astype(jnp.float32)
    logits = h @ w2f + b2f
    out = jax.nn.sigmoid(logits) if O == 1 else jax.nn.softmax(logits, axis=0)
    return out.astype(out_dtype).astype(jnp.float32)


if __name__ == "__main__":
    feature_size = 32
    hidden_size = 16     # fixed by create_mlp([feature_size, 16, output_size])
    batch = 8

    key = jax.random.PRNGKey(0)
    kx, kp1, kp2 = jax.random.split(key, 3)
    x = jax.random.normal(kx, (batch, feature_size), jnp.float32)

    # --- softmax(dim=0) branch (output_size > 1) ---
    output_size = 4
    w1, b1, w2, b2 = init_params(kp1, feature_size, hidden_size, output_size)
    out = jax.block_until_ready(simple_mlp_forward(x, w1, b1, w2, b2))
    assert out.shape == (batch, output_size)
    out32 = out.astype(jnp.float32)
    ref_kernel_numerics = reference_forward_packed(x, w1, b1, w2, b2)
    ref_f32 = reference_forward(x, w1, b1, w2, b2)
    assert jnp.allclose(out32, ref_kernel_numerics, atol=8e-3, rtol=8e-3), \
        "softmax branch mismatch vs kernel-numerics reference"
    assert jnp.allclose(out32, ref_f32, atol=5e-2, rtol=5e-2), \
        "softmax branch drifted too far from full-f32 reference"
    # columns of softmax(dim=0) sum to ~1 over the batch axis
    assert jnp.allclose(jnp.sum(out32, axis=0), jnp.ones((output_size,)), atol=1e-2)

    # --- sigmoid branch (output_size == 1) ---
    w1s, b1s, w2s, b2s = init_params(kp2, feature_size, hidden_size, 1)
    out_s = jax.block_until_ready(simple_mlp_forward(x, w1s, b1s, w2s, b2s))
    assert out_s.shape == (batch, 1)
    out_s32 = out_s.astype(jnp.float32)
    assert jnp.allclose(out_s32, reference_forward_packed(x, w1s, b1s, w2s, b2s),
                        atol=8e-3, rtol=8e-3), "sigmoid branch mismatch"
    assert jnp.allclose(out_s32, reference_forward(x, w1s, b1s, w2s, b2s),
                        atol=5e-2, rtol=5e-2), "sigmoid branch drifted from f32 reference"

    print("KERNEL_OK")
</pallas_src>

<mosaic_0001>
module attributes {stable_mosaic.version = 11 : i64} {
  func.func @_mlp_kernel(%arg0: i32, %arg1: memref<8x32xf32, #tpu.memory_space<vmem>>, %arg2: memref<176x128xbf16, #tpu.memory_space<vmem>>, %arg3: memref<8x128xbf16, #tpu.memory_space<vmem>>) attributes {dimension_semantics = [#tpu.dimension_semantics<arbitrary>], iteration_bounds = array<i64: 1>, scalar_prefetch = 0 : i64, scratch_operands = 0 : i64, tpu.core_type = #tpu.core_type<tc>, window_params = [{transform_indices = @transform_0, window_bounds = array<i64: 8, 32>}, {pipeline_mode = #tpu.pipeline_mode<synchronous>, transform_indices = @transform_1, window_bounds = array<i64: 176, 128>}, {transform_indices = @transform_2, window_bounds = array<i64: 8, 128>}]} {
    %c0 = arith.constant 0 : index
    %c0_0 = arith.constant 0 : index
    %0 = vector.load %arg1[%c0, %c0_0] : memref<8x32xf32, #tpu.memory_space<vmem>>, vector<8x32xf32>
    %1 = arith.truncf %0 : vector<8x32xf32> to vector<8x32xbf16>
    %c0_1 = arith.constant 0 : index
    %c0_2 = arith.constant 0 : index
    %2 = vector.load %arg2[%c0_1, %c0_2] : memref<176x128xbf16, #tpu.memory_space<vmem>>, vector<32x128xbf16>
    %c32 = arith.constant 32 : index
    %c0_3 = arith.constant 0 : index
    %3 = vector.load %arg2[%c32, %c0_3] : memref<176x128xbf16, #tpu.memory_space<vmem>>, vector<16x128xbf16>
    %4 = arith.extf %3 : vector<16x128xbf16> to vector<16x128xf32>
    %5 = vector.extract_strided_slice %4 {offsets = [0, 0], sizes = [1, 128], strides = [1, 1]} : vector<16x128xf32> to vector<1x128xf32>
    %6 = vector.extract_strided_slice %4 {offsets = [1, 0], sizes = [1, 128], strides = [1, 1]} : vector<16x128xf32> to vector<1x128xf32>
    %c48 = arith.constant 48 : index
    %c0_4 = arith.constant 0 : index
    %7 = vector.load %arg2[%c48, %c0_4] : memref<176x128xbf16, #tpu.memory_space<vmem>>, vector<128x128xbf16>
    %cst = arith.constant dense<0.000000e+00> : vector<8x128xf32>
    %8 = tpu.matmul %1, %2, %cst {dimension_numbers = #tpu.dot_dimension_numbers<[1], [0], [0], [1], [0, 0, 1, 1], [], []>} : vector<8x32xbf16>, vector<32x128xbf16>, vector<8x128xf32> -> vector<8x128xf32>
    %9 = vector.broadcast %5 : vector<1x128xf32> to vector<8x128xf32>
    %10 = arith.addf %8, %9 : vector<8x128xf32>
    %cst_5 = arith.constant 0.000000e+00 : f32
    %11 = vector.broadcast %cst_5 : f32 to vector<8x128xf32>
    %12 = arith.maximumf %10, %11 : vector<8x128xf32>
    %13 = arith.truncf %12 : vector<8x128xf32> to vector<8x128xbf16>
    %cst_6 = arith.constant dense<0.000000e+00> : vector<8x128xf32>
    %14 = tpu.matmul %13, %7, %cst_6 {dimension_numbers = #tpu.dot_dimension_numbers<[1], [0], [0], [1], [0, 0, 1, 1], [], []>} : vector<8x128xbf16>, vector<128x128xbf16>, vector<8x128xf32> -> vector<8x128xf32>
    %15 = vector.broadcast %6 : vector<1x128xf32> to vector<8x128xf32>
    %16 = arith.addf %14, %15 : vector<8x128xf32>
    %cst_7 = arith.constant dense<0xFF800000> : vector<128xf32>
    %17 = vector.multi_reduction <maximumf>, %16, %cst_7 [0] : vector<8x128xf32> to vector<128xf32>
    %18 = vector.shape_cast %17 : vector<128xf32> to vector<1x128xf32>
    %19 = vector.broadcast %18 : vector<1x128xf32> to vector<8x128xf32>
    %20 = arith.subf %16, %19 : vector<8x128xf32>
    %21 = math.exp %20 : vector<8x128xf32>
    %cst_8 = arith.constant dense<0.000000e+00> : vector<128xf32>
    %22 = vector.multi_reduction <add>, %21, %cst_8 [0] : vector<8x128xf32> to vector<128xf32>
    %23 = vector.shape_cast %22 : vector<128xf32> to vector<1x128xf32>
    %24 = tpu.reciprocal %23 {approx = true} : vector<1x128xf32> -> vector<1x128xf32>
    %25 = vector.broadcast %24 : vector<1x128xf32> to vector<8x128xf32>
    %26 = arith.mulf %21, %25 : vector<8x128xf32>
    %27 = arith.truncf %26 : vector<8x128xf32> to vector<8x128xbf16>
    %c0_9 = arith.constant 0 : index
    %c0_10 = arith.constant 0 : index
    %28 = vector.load %arg3[%c0_9, %c0_10] : memref<8x128xbf16, #tpu.memory_space<vmem>>, vector<8x128xbf16>
    tpu.vector_store %arg3[%c0_9, %c0_10], %27 {strides = array<i32>} : memref<8x128xbf16, #tpu.memory_space<vmem>>, vector<8x128xbf16>,
    return
  }
  func.func @transform_0(%arg0: i32) -> (i32, i32) {
    %c0_i32 = arith.constant 0 : i32
    %c0_i32_0 = arith.constant 0 : i32
    return %arg0, %c0_i32 : i32, i32
  }
  func.func @transform_1(%arg0: i32) -> (i32, i32) {
    %c0_i32 = arith.constant 0 : i32
    %c0_i32_0 = arith.constant 0 : i32
    %c0_i32_1 = arith.constant 0 : i32
    return %c0_i32, %c0_i32_0 : i32, i32
  }
  func.func @transform_2(%arg0: i32) -> (i32, i32) {
    %c0_i32 = arith.constant 0 : i32
    %c0_i32_0 = arith.constant 0 : i32
    return %arg0, %c0_i32 : i32, i32
  }
}

</mosaic_0001>

<bundles_post_ra>
// kernel: tpu_custom_call.1
= control target key start
LH: loop header
LB: loop body
LE: loop exit
PB: predicated region body
PF: predicated region fallthrough
CT: control target
= control target key end

     0   :  { %7 = vsyncpa [#allocation3], 0  ;;  %s461_s0 = inlined_call_operand.hbm [shape: f32[8,32], index: 0, kind: input, shape index: {}]   ;;  %s462_s1 = inlined_call_operand.hbm [shape: bf16[176,128], index: 1, kind: input, shape index: {}]   ;;  %s463_s2 = inlined_call_operand.hbm [shape: bf16[8,128], index: 2, kind: output, shape index: {}]  }
   0x1   :  { %8 = vsyncpa [#allocation6], 0 }
   0x2   :  { %9 = vsyncpa [#allocation4], 0  ;;  %s396_s9 = smov [#allocation2]   ;;  %s397_s11 = smov [#allocation5]  }
   0x3   :  { %s16_s10 = sshll.u32 %s396_s9, 4  ;;  %s25_s12 = sshll.u32 %s397_s11, 4  ;;  %s17_s10 = int_to_ptr.vmem [resolvable:$true] %s16_s10  ;;  %s418_s12 = int_to_ptr.vmem [resolvable:$true] %s25_s12 }
   0x4   :  { %s324_s15 = scalar_lea.hbm %s461_s0, 128 }
   0x5   :  { %p325_p0 = scmp.ne.s32.totalorder %s461_s0, %s324_s15  ;;  %p328_p1 = scmp.lt.u32.totalorder %s324_s15, %s461_s0 }
   0x7   :  { %p330_p2 = pnand %p328_p1, %p325_p0 }
   0x9   :  { %333 = shalt.err (!%p330_p2)
}
   0xa   :  { %s334_s20 = scalar_lea.vmem %s17_s10, 128  ;;  %p339_p4 = scmp.lt.s32.totalorder %s17_s10, %s17_s10 }
   0xb   :  { %p335_p3 = scmp.ne.s32.totalorder %s17_s10, %s334_s20  ;;  %p340_p5 = scmp.lt.s32.totalorder %s334_s20, %s334_s20 }
   0xd   :  { %p341_p6 = por %p340_p5, %p339_p4 }
   0xf   :  { %p342_p7 = pnand %p341_p6, %p335_p3 }
  0x11   :  { %345 = shalt.err (!%p342_p7)
}
  0x12   :  { %19 = dma.hbm_to_vmem [thread:$0]  %s461_s0, 128, %s17_s10, [#allocation3]  }
  0x13   :  { %s346_s25 = scalar_lea.hbm %s462_s1, 1408 }
  0x14   :  { %p347_p8 = scmp.ne.s32.totalorder %s462_s1, %s346_s25  ;;  %p350_p9 = scmp.lt.u32.totalorder %s346_s25, %s462_s1 }
  0x16   :  { %p352_p10 = pnand %p350_p9, %p347_p8 }
  0x18   :  { %355 = shalt.err (!%p352_p10)
}
  0x19   :  { %s356_s30 = scalar_lea.vmem %s418_s12, 1408  ;;  %p361_p12 = scmp.lt.s32.totalorder %s418_s12, %s418_s12 }
  0x1a   :  { %p357_p11 = scmp.ne.s32.totalorder %s418_s12, %s356_s30  ;;  %p362_p13 = scmp.lt.s32.totalorder %s356_s30, %s356_s30 }
  0x1c   :  { %p363_p0 = por %p362_p13, %p361_p12 }
  0x1e   :  { %p364_p1 = pnand %p363_p0, %p357_p11 }
  0x20   :  { %367 = shalt.err (!%p364_p1)
}
  0x21   :  { %s398_s0 = smov 64   ;;  %s399_s3 = smov 4  }
  0x22   :  { %31 = dma.hbm_to_vmem [thread:$0]  %s462_s1, 1408, %s418_s12, [#allocation6], %s398_s0, %s398_s0, %s399_s3  }
  0x23   :  { %390 = dma.done.wait [#allocation3], 128  }
  0x24   :  { %391 = vsyncadd [#allocation3], 4294967168 }
  0x25   :  { %392 = dma.done.wait [#allocation6], 1408  }
  0x26   :  { %393 = vsyncadd [#allocation6], 4294965888  ;;  %v400_v0 = vmov 0.0   ;;  %vm401_vm0 = vmmov 0   ;;  %v310_v1 = vld [vmem:[#allocation5] sm:$0xff]   ;;  %v311_v2 = vld [vmem:[#allocation5 + $0x8] sm:$0xff]   ;;  %v63_v13 = vlaneseq }
  0x27   :  { %275 = vmatprep.subr.bf16.mxu0 %v400_v0  ;;  %279 = vmatprep.mubr.msk.bf16.mxu0 %vm401_vm0, %v400_v0  ;;  %v39_v3 = vld [vmem:[#allocation2] sm:$0xff]  ;;  %v313_v6 = vld [vmem:[#allocation5 + $0x20] sm:$0xff]   ;;  %vm79_vm1 = vcmask 261120   ;;  %v314_v7 = vld [vmem:[#allocation5 + $0x28] sm:$0xff]   ;;  %s402_s1 = smov [#allocation7]  }
  0x28   :  { %283 = vmatprep.subr.bf16.mxu1 %v400_v0  ;;  %299 = vmatprep.mubr.msk.bf16.mxu1 %vm401_vm0, %v400_v0  ;;  %v312_v4 = vld [vmem:[#allocation5 + $0x18] sm:$0xff]   ;;  %v40_v5 = vpack.c.bf16 %v39_v3, %v39_v3  ;;  %v315_v8 = vld [vmem:[#allocation5 + $0x30] sm:$0xff]   ;;  %v317_v10 = vld [vmem:[#allocation5 + $0x40] sm:$0xff]   ;;  %v64_v14 = vshrl.u32 %v63_v13, 7  ;;  %s242_s6 = sshll.u32 %s402_s1, 4  ;;  %s243_s6 = int_to_ptr.vmem [resolvable:$true] %s242_s6 }
  0x29   :  { %276 = vmatpush3.bf16.msra.mxu0 %v310_v1  ;;  %284 = vmatpush3.bf16.msra.mxu1 %v312_v4  ;;  %v316_v9 = vld [vmem:[#allocation5 + $0x38] sm:$0xff]   ;;  %v318_v11 = vld [vmem:[#allocation5 + $0x48] sm:$0xff]   ;;  %v319_v12 = vld [vmem:[#allocation5 + $0x50] sm:$0xff]   ;;  %s368_s7 = scalar_lea.vmem %s243_s6, 64  ;;  %p373_p3 = scmp.lt.s32.totalorder %s243_s6, %s243_s6 }
  0x2a   :  { %277 = vmatprep.subr.bf16.mxu0 %v400_v0  ;;  %285 = vmatprep.subr.bf16.mxu1 %v400_v0  ;;  %v45_v15 = vld [vmem:[#allocation5 + $0x10] sm:$0xf]  ;;  %v65_v17 = vsub.s32 0, %v64_v14  ;;  %v127_v26 = vsub.s32 1, %v64_v14  ;;  %p369_p2 = scmp.ne.s32.totalorder %s243_s6, %s368_s7  ;;  %p374_p4 = scmp.lt.s32.totalorder %s368_s7, %s368_s7 }
  0x2b   :  { %v46_v16 = vunpack.c.l.bf16 %v45_v15 }
  0x2c   :  { %p375_p5 = por %p374_p4, %p373_p3 }
  0x2d   :  { %278 = vmatpush3.bf16.msra.mxu0 %v311_v2  ;;  %286 = vmatpush3.bf16.msra.mxu1 %v313_v6  ;;  %v66_v18 = vrot.slane %v46_v16, %v65_v17  ;;  %v128_v27 = vrot.slane %v46_v16, %v127_v26 }
  0x2e   :  { %287 = vmatprep.subr.bf16.mxu1 %v400_v0  ;;  %p376_p6 = pnand %p375_p5, %p369_p2 }
  0x30   :  { %280 = vmatmul.mubr.msk.bf16.vlgmr.msra.gmra.mrb[0].mxu0 %vm79_vm1, %v40_v5 }
  0x31   :  { %288 = vmatpush3.bf16.msra.mxu1 %v314_v7 }
  0x32   :  { %289 = vmatprep.subr.bf16.mxu1 %v400_v0 }
  0x35   :  { %290 = vmatpush3.bf16.msra.mxu1 %v315_v8 }
  0x36   :  { %291 = vmatprep.subr.bf16.mxu1 %v400_v0 }
  0x39   :  { %292 = vmatpush3.bf16.msra.mxu1 %v316_v9 }
  0x3a   :  { %293 = vmatprep.subr.bf16.mxu1 %v400_v0 }
  0x3d   :  { %294 = vmatpush3.bf16.msra.mxu1 %v317_v10 }
  0x3e   :  { %295 = vmatprep.subr.bf16.mxu1 %v400_v0 }
  0x41   :  { %296 = vmatpush3.bf16.msra.mxu1 %v318_v11 }
  0x42   :  { %297 = vmatprep.subr.bf16.mxu1 %v400_v0 }
  0x45   :  { %298 = vmatpush3.bf16.msra.mxu1 %v319_v12 }
 0x103   :  { %v117_v19 = vpop.f32.mrb[0].mxu0 }
 0x104   :  { %v118_v20 = vadd.f32 %v117_v19, %v66_v18  ;;  %v281_v21 = vpop.f32.mrb[1].mxu0 }
 0x105   :  { %v120_v22 = vpop.f32.mrb[2].mxu0 }
 0x106   :  { %v123_v23 = vmax.f32 %v118_v20, 0.0  ;;  %v282_v24 = vpop.f32.mrb[3].mxu0 }
 0x108   :  { %v124_v25 = vpack.c.bf16 %v123_v23, %v123_v23 }
 0x10a   :  { %300 = vmatmul.mubr.bf16.vlgmr.msra.gmra.mrb[0].mxu1 %v124_v25 }
 0x1dd   :  { %v211_v28 = vpop.f32.mrb[0].mxu1 }
 0x1de   :  { %v212_v29 = vadd.f32 %v211_v28, %v128_v27  ;;  %v301_v30 = vpop.f32.mrb[1].mxu1 }
 0x1df   :  { %v214_v31 = vpop.f32.mrb[2].mxu1 }
 0x1e0   :  { %v217_v32 = vrot.slane %v212_v29, 4  ;;  %v302_v33 = vpop.f32.mrb[3].mxu1 }
 0x1e2   :  { %v218_v34 = vmax.f32 %v212_v29, %v217_v32 }
 0x1e4   :  { %v219_v35 = vrot.slane %v218_v34, 2 }
 0x1e6   :  { %v220_v36 = vmax.f32 %v218_v34, %v219_v35 }
 0x1e8   :  { %v221_v37 = vrot.slane %v220_v36, 1 }
 0x1ea   :  { %v222_v38 = vmax.f32 %v220_v36, %v221_v37 }
 0x1ec   :  { %v223_v39 = vsub.f32 %v212_v29, %v222_v38 }
 0x1ee   :  { %v224_v40 = vmul.f32 1.442695, %v223_v39 }
 0x1f0   :  { %320 = vpow2.f32 %v224_v40 }
 0x1fa   :  { %v321_v41 = vpop.eup %320 }
 0x1fb   :  { %v226_v42 = vrot.slane %v321_v41, 4 }
 0x1fd   :  { %v227_v43 = vadd.f32 %v321_v41, %v226_v42 }
 0x1ff   :  { %v228_v44 = vrot.slane %v227_v43, 2 }
 0x201   :  { %v229_v45 = vadd.f32 %v228_v44, %v227_v43 }
 0x203   :  { %v230_v46 = vrot.slane %v229_v45, 1 }
 0x205   :  { %v231_v47 = vadd.f32 %v230_v46, %v229_v45 }
 0x207   :  { %322 = vrcp.f32 %v231_v47 }
 0x211   :  { %v323_v48 = vpop.eup %322 }
 0x212   :  { %v233_v49 = vmul.f32 %v323_v48, %v321_v41 }
 0x214   :  { %v234_v50 = vpack.c.bf16 %v233_v49, %v233_v49 }
 0x216   :  { %235 = vst [vmem:[#allocation7] sm:$0xf] %v234_v50 }
 0x217   :  { %379 = shalt.err (!%p376_p6)
}
 0x218   :  { %s380_s10 = scalar_lea.hbm %s463_s2, 64 }
 0x219   :  { %p381_p7 = scmp.ne.s32.totalorder %s463_s2, %s380_s10  ;;  %p384_p8 = scmp.lt.u32.totalorder %s380_s10, %s463_s2 }
 0x21b   :  { %p386_p9 = pnand %p384_p8, %p381_p7 }
 0x21d   :  { %389 = shalt.err (!%p386_p9)
}
 0x21e   :  { %245 = dma.vmem_to_hbm [thread:$0]  %s243_s6, 64, %s463_s2, [#allocation4]  }
 0x21f   :  { %394 = dma.done.wait [#allocation4], 64  }
 0x220   :  { %395 = vsyncadd [#allocation4], 4294967232 }
 0x221   :  { %249 = vsyncpa [#allocation3], 1 }
 0x222   :  { %250 = vsyncpa [#allocation6], 1 }
 0x223   :  { %251 = vsyncpa [#allocation4], 1 }

</bundles_post_ra>
